<compile_context>
chip_gen: v6e
topology: v6e:2x2x1
jax: 0.10.0
libtpu: 0.0.40
codegen_flags: <defaults>
</compile_context>

<pallas_src>
import functools
import math

import jax
import jax.numpy as jnp
from jax.experimental import pallas as pl
from jax.experimental.pallas import tpu as pltpu


def _silu(x):
    return x * jax.nn.sigmoid(x)


def _dot(a, w):
    # bf16 MXU inputs (weights are pre-cast bf16), f32 accumulation.
    return jnp.dot(a.astype(jnp.bfloat16), w, preferred_element_type=jnp.float32)


def _round_up(x, m):
    return (x + m - 1) // m * m


# ----------------------------------------------------------------------------
# Pallas kernels
# ----------------------------------------------------------------------------
def _mlp2_kernel(x_ref, w1_ref, b1_ref, w2_ref, b2_ref, o_ref):
    h = _silu(_dot(x_ref[...], w1_ref[...]) + b1_ref[...])
    o_ref[...] = _silu(_dot(h, w2_ref[...]) + b2_ref[...])


def _mlp3_kernel(x_ref, w1_ref, b1_ref, w2_ref, b2_ref, w3_ref, b3_ref, o_ref,
                 *, last_act):
    h = _silu(_dot(x_ref[...], w1_ref[...]) + b1_ref[...])
    h = _silu(_dot(h, w2_ref[...]) + b2_ref[...])
    y = _dot(h, w3_ref[...]) + b3_ref[...]
    o_ref[...] = _silu(y) if last_act else y


def _edge_msg_kernel(xsrc_ref, xdst_ref, e0_ref, decay_ref, fmes_ref,
                     wa_ref, wb_ref, wc_ref, b1_ref, w2_ref, b2_ref, o_ref):
    # f_int(cat([x_src, e0, x_dst])) with the 3H->H weight pre-split into 3
    # HxH blocks (avoids an in-kernel lane concat; mathematically identical).
    h = (_dot(xsrc_ref[...], wa_ref[...])
         + _dot(e0_ref[...], wb_ref[...])
         + _dot(xdst_ref[...], wc_ref[...])
         + b1_ref[...])
    h = _silu(h)
    f_int = _silu(_dot(h, w2_ref[...]) + b2_ref[...])
    # f_mes(x_src) is hoisted to the node kernel and gathered -> fmes_ref.
    o_ref[...] = decay_ref[...] * f_int * fmes_ref[...]


def _node_msg_kernel(x_ref, wm1_ref, bm1_ref, wm2_ref, bm2_ref, mask_ref,
                     fmes_ref, mt_ref):
    h = _silu(_dot(x_ref[...], wm1_ref[...]) + bm1_ref[...])
    fmes = _silu(_dot(h, wm2_ref[...]) + bm2_ref[...])
    fmes_ref[...] = fmes                       # reused for edges (gathered)
    mt_ref[...] = _dot(fmes, mask_ref[...])    # m_t = f_mes(x) @ ind_imp_mask


def _f_upd_kernel(z_ref, res_ref, w1_ref, b1_ref, w2_ref, b2_ref,
                  gamma_ref, beta_ref, o_ref):
    h = _silu(_dot(z_ref[...], w1_ref[...]) + b1_ref[...])
    h = _dot(h, w2_ref[...]) + b2_ref[...]
    # BatchNorm1d in training mode: batch statistics (biased variance).
    # TODO(synk): eval-mode running statistics are not modelled (synthetic init).
    mean = jnp.mean(h, axis=0, keepdims=True)
    var = jnp.mean((h - mean) ** 2, axis=0, keepdims=True)
    hn = (h - mean) * jax.lax.rsqrt(var + 1e-5) * gamma_ref[...] + beta_ref[...]
    # residual from GNN.forward:  x = layer(...) + x  (fused here)
    o_ref[...] = _silu(hn) + res_ref[...]


# ----------------------------------------------------------------------------
# pallas_call wrappers
# ----------------------------------------------------------------------------
_VMEM = pltpu.MemorySpace.VMEM
_PARALLEL = pltpu.CompilerParams(dimension_semantics=("parallel",))


def _full_spec(a):
    return pl.BlockSpec(a.shape, lambda i: (0,) * a.ndim)


def _row_spec(ncols, tile):
    return pl.BlockSpec((tile, ncols), lambda i: (i, 0))


def _tile_and_pad(rows, cap=256):
    """Row tile (multiple of 8, capped) and padded row count divisible by it."""
    rp = _round_up(max(rows, 1), 8)
    if rp <= cap:
        return rp, rp
    return cap, _round_up(rows, cap)


def _pad_rows(a, rp):
    if a.shape[0] == rp:
        return a
    return jnp.pad(a, ((0, rp - a.shape[0]),) + ((0, 0),) * (a.ndim - 1))


def mlp2(x, w1, b1, w2, b2):
    rows = x.shape[0]
    dout = w2.shape[1]
    tile, rp = _tile_and_pad(rows)
    out = pl.pallas_call(
        _mlp2_kernel,
        out_shape=jax.ShapeDtypeStruct((rp, dout), jnp.float32),
        grid=(rp // tile,),
        in_specs=[_row_spec(x.shape[1], tile), _full_spec(w1), _full_spec(b1),
                  _full_spec(w2), _full_spec(b2)],
        out_specs=_row_spec(dout, tile),
        compiler_params=_PARALLEL,
    )(_pad_rows(x, rp), w1, b1, w2, b2)
    return out[:rows]


def mlp3(x, w1, b1, w2, b2, w3, b3, *, last_act):
    rows = x.shape[0]
    dout = w3.shape[1]
    tile, rp = _tile_and_pad(rows)
    out = pl.pallas_call(
        functools.partial(_mlp3_kernel, last_act=last_act),
        out_shape=jax.ShapeDtypeStruct((rp, dout), jnp.float32),
        grid=(rp // tile,),
        in_specs=[_row_spec(x.shape[1], tile), _full_spec(w1), _full_spec(b1),
                  _full_spec(w2), _full_spec(b2), _full_spec(w3), _full_spec(b3)],
        out_specs=_row_spec(dout, tile),
        compiler_params=_PARALLEL,
    )(_pad_rows(x, rp), w1, b1, w2, b2, w3, b3)
    return out[:rows]


def edge_message(x_src, x_dst, e0, decay, fmes_src, wa, wb, wc, b1, w2, b2):
    e, hpad = x_src.shape
    tile, rp = _tile_and_pad(e)
    pad = lambda a: _pad_rows(a, rp)
    out = pl.pallas_call(
        _edge_msg_kernel,
        out_shape=jax.ShapeDtypeStruct((rp, hpad), jnp.float32),
        grid=(rp // tile,),
        in_specs=[_row_spec(hpad, tile), _row_spec(hpad, tile),
                  _row_spec(hpad, tile), _row_spec(1, tile),
                  _row_spec(hpad, tile),
                  _full_spec(wa), _full_spec(wb), _full_spec(wc),
                  _full_spec(b1), _full_spec(w2), _full_spec(b2)],
        out_specs=_row_spec(hpad, tile),
        compiler_params=_PARALLEL,
    )(pad(x_src), pad(x_dst), pad(e0), pad(decay), pad(fmes_src),
      wa, wb, wc, b1, w2, b2)
    return out[:e]


def node_message(x, wm1, bm1, wm2, bm2, mask):
    n, hpad = x.shape
    tile, rp = _tile_and_pad(n)
    fmes, m_t = pl.pallas_call(
        _node_msg_kernel,
        out_shape=(jax.ShapeDtypeStruct((rp, hpad), jnp.float32),
                   jax.ShapeDtypeStruct((rp, hpad), jnp.float32)),
        grid=(rp // tile,),
        in_specs=[_row_spec(hpad, tile), _full_spec(wm1), _full_spec(bm1),
                  _full_spec(wm2), _full_spec(bm2), _full_spec(mask)],
        out_specs=(_row_spec(hpad, tile), _row_spec(hpad, tile)),
        compiler_params=_PARALLEL,
    )(_pad_rows(x, rp), wm1, bm1, wm2, bm2, mask)
    return fmes[:n], m_t[:n]


def f_upd(z, residual, w1, b1, w2, b2, gamma, beta):
    # whole-N block: BatchNorm needs full-batch statistics over exactly N rows.
    # TODO(synk): for large N (v7x 64 MiB VMEM) tile rows with a two-pass BN
    # stats scheme and a 'parallel' grid axis for the second TensorCore.
    return pl.pallas_call(
        _f_upd_kernel,
        out_shape=jax.ShapeDtypeStruct(z.shape, jnp.float32),
        in_specs=[pl.BlockSpec(memory_space=_VMEM)] * 8,
        out_specs=pl.BlockSpec(memory_space=_VMEM),
    )(z, residual, w1, b1, w2, b2, gamma, beta)


# ----------------------------------------------------------------------------
# Model glue (plain JAX)
# ----------------------------------------------------------------------------
def gaussian_expand(dist, num_steps):
    mu = jnp.linspace(0.0, 1.0, num_steps, dtype=jnp.float32)
    sigma = 1.0 / (num_steps - 1)
    g = jnp.exp(-(dist[..., None] - mu) ** 2 / (2.0 * sigma ** 2))
    return g.reshape(dist.shape[0], -1)


def gnn_layer_forward(lp, x, src, dst, norm_distance, init_edge_states):
    decay = jnp.cos(jnp.pi / 2.0 * norm_distance).reshape(-1, 1)
    # f_mes computed once per node (hoisted out of the per-edge kernel) and
    # fused with the m_t self-message matmul.
    fmes_x, m_t = node_message(x, *lp['f_mes'], lp['ind_imp_mask'])
    # TODO(synk): fuse x[src]/x[dst]/fmes[src] gathers into the edge kernel via
    # PrefetchScalarGridSpec + pl.Element row maps instead of jnp.take.
    x_src = jnp.take(x, src, axis=0)
    x_dst = jnp.take(x, dst, axis=0)
    fmes_src = jnp.take(fmes_x, src, axis=0)
    m_st = edge_message(x_src, x_dst, init_edge_states, decay, fmes_src,
                        *lp['f_int'])
    n, hpad = x.shape
    # scatter_mean over dst (glue; rows with no incoming edges -> 0, matching
    # the reference's zero-padding of the scatter_mean output)
    sums = jnp.zeros((n, hpad), jnp.float32).at[dst].add(m_st)
    cnts = jnp.zeros((n, 1), jnp.float32).at[dst].add(1.0)
    incoming = sums / jnp.maximum(cnts, 1.0)
    return f_upd(m_t + incoming, x, *lp['f_upd'], lp['bn_gamma'], lp['bn_beta'])


def gnn_forward(params, batch, targets, loss_fn, loss_weights, gaussian_num_steps):
    disp = batch['ex_norm_displacement']                       # [E, 4]
    init_edge_states = mlp3(gaussian_expand(disp, gaussian_num_steps),
                            *params['f_edge'], last_act=True)   # [E, Hp]
    x = mlp2(batch['x'], *params['f_node'])                     # [N, Hp]
    src, dst = batch['edge_index'][0], batch['edge_index'][1]
    for lp in params['layers']:
        # residual "+ x" is fused into the f_upd kernel
        x = gnn_layer_forward(lp, x, src, dst, disp[:, -1], init_edge_states)

    results = []
    total_loss = 0.0
    num_graphs = int(batch['num_graphs'])
    for t, head in zip(targets, params['f_target']):
        if t['level'] == 'node':
            data = mlp3(x, *head, last_act=False)[:, :t['dim']]
        elif t['level'] == 'graph':
            gidx = batch['batch']
            sums = jnp.zeros((num_graphs, x.shape[1]), jnp.float32).at[gidx].add(x)
            cnts = jnp.zeros((num_graphs, 1), jnp.float32).at[gidx].add(1.0)
            pooled = sums / jnp.maximum(cnts, 1.0)
            data = mlp3(pooled, *head, last_act=False)[:, :t['dim']]
        else:
            raise Exception(f"Unrecognized level: {t['level']}")
        gt = batch[t['name']]
        loss = loss_fn(data, gt)
        total_loss = total_loss + loss_weights[t['name']] * loss
        rel = jnp.mean(jnp.linalg.norm(data - gt, axis=1)
                       / jnp.linalg.norm(gt + 1e-9, axis=1))
        results.append({'name': t['name'], 'level': t['level'],
                        'data': data, 'loss': loss, 'relative loss': rel})
    return total_loss, results


# ----------------------------------------------------------------------------
# Deterministic parameter init (shapes from the PyTorch __init__), padded to
# lane-dense widths (multiples of 128) and cast to bf16 for the MXU.
# ----------------------------------------------------------------------------
def _xavier_uniform(key, in_dim, out_dim):
    limit = math.sqrt(6.0 / (in_dim + out_dim))
    return jax.random.uniform(key, (in_dim, out_dim), jnp.float32, -limit, limit)


def init_params(key, num_layers, x_size, hidden, gsteps, targets):
    hp = _round_up(hidden, 128)
    keys = iter(jax.random.split(key, 256))

    def lin(i, o, ip, op):
        w = _xavier_uniform(next(keys), i, o)
        wp = jnp.zeros((ip, op), jnp.float32).at[:i, :o].set(w).astype(jnp.bfloat16)
        bp = jnp.zeros((1, op), jnp.float32).at[:, :o].set(0.001)
        return wp, bp

    params = {
        'f_edge': (lin(4 * gsteps, hidden, 4 * gsteps, hp)
                   + lin(hidden, hidden, hp, hp) + lin(hidden, hidden, hp, hp)),
        'f_node': lin(x_size, hidden, x_size, hp) + lin(hidden, hidden, hp, hp),
    }

    def pad_sq(w):
        return (jnp.zeros((hp, hp), jnp.float32)
                .at[:w.shape[0], :w.shape[1]].set(w).astype(jnp.bfloat16))

    layers = []
    for _ in range(num_layers):
        wi1 = _xavier_uniform(next(keys), 3 * hidden, hidden)
        bi1 = jnp.zeros((1, hp), jnp.float32).at[:, :hidden].set(0.001)
        wa, wb, wc = (pad_sq(wi1[:hidden]), pad_sq(wi1[hidden:2 * hidden]),
                      pad_sq(wi1[2 * hidden:]))
        wi2, bi2 = lin(hidden, hidden, hp, hp)
        # reference inits ind_imp_mask to zeros; use small random values here
        # so the MXU path is actually exercised
        mask = 0.1 * jax.random.normal(next(keys), (hidden, hidden), jnp.float32)
        layers.append({
            'f_int': (wa, wb, wc, bi1, wi2, bi2),
            'f_mes': lin(hidden, hidden, hp, hp) + lin(hidden, hidden, hp, hp),
            'f_upd': lin(hidden, hidden, hp, hp) + lin(hidden, hidden, hp, hp),
            'bn_gamma': jnp.ones((1, hp), jnp.float32),
            'bn_beta': jnp.zeros((1, hp), jnp.float32),
            'ind_imp_mask': pad_sq(mask),
        })
    params['layers'] = layers

    h2, h4 = hidden // 2, hidden // 4
    h2p, h4p = _round_up(h2, 128), _round_up(h4, 128)
    params['f_target'] = [
        (lin(hidden, h2, hp, h2p) + lin(h2, h4, h2p, h4p)
         + lin(h4, t['dim'], h4p, _round_up(t['dim'], 128)))
        for t in targets
    ]
    return params


# ----------------------------------------------------------------------------
if __name__ == "__main__":
    NUM_LAYERS, X_SIZE, HIDDEN, GSTEPS = 2, 8, 32, 8
    N, E, NUM_GRAPHS = 16, 32, 2

    targets = [{'name': 'energy', 'level': 'graph', 'dim': 1},
               {'name': 'forces', 'level': 'node', 'dim': 3}]
    # loss_weights / loss_fn are external globals in the reference -> MSE / 1.0
    loss_weights = {'energy': 1.0, 'forces': 1.0}
    loss_fn = lambda pred, gt: jnp.mean((pred - gt) ** 2)

    key = jax.random.PRNGKey(0)
    kx, ke, kd, kgt1, kgt2, kp = jax.random.split(key, 6)
    batch = {
        'x': jax.random.normal(kx, (N, X_SIZE), jnp.float32),
        'edge_index': jax.random.randint(ke, (2, E), 0, N),
        'ex_norm_displacement': jax.random.uniform(kd, (E, 4), jnp.float32),
        'batch': jnp.repeat(jnp.arange(NUM_GRAPHS), N // NUM_GRAPHS),
        'num_graphs': NUM_GRAPHS,
        'energy': jax.random.normal(kgt1, (NUM_GRAPHS, 1), jnp.float32),
        'forces': jax.random.normal(kgt2, (N, 3), jnp.float32),
    }

    params = init_params(kp, NUM_LAYERS, X_SIZE, HIDDEN, GSTEPS, targets)

    total_loss, results = gnn_forward(params, batch, targets, loss_fn,
                                      loss_weights, GSTEPS)
    jax.block_until_ready(total_loss)
    for r in results:
        jax.block_until_ready(r['data'])
        jax.block_until_ready(r['loss'])
    print("KERNEL_OK")
</pallas_src>

<mosaic_0001>
module attributes {stable_mosaic.version = 11 : i64} {
  func.func @_mlp3_kernel(%arg0: i32, %arg1: memref<32x32xf32, #tpu.memory_space<vmem>>, %arg2: memref<32x128xbf16, #tpu.memory_space<vmem>>, %arg3: memref<1x128xf32, #tpu.memory_space<vmem>>, %arg4: memref<128x128xbf16, #tpu.memory_space<vmem>>, %arg5: memref<1x128xf32, #tpu.memory_space<vmem>>, %arg6: memref<128x128xbf16, #tpu.memory_space<vmem>>, %arg7: memref<1x128xf32, #tpu.memory_space<vmem>>, %arg8: memref<32x128xf32, #tpu.memory_space<vmem>>) attributes {dimension_semantics = [#tpu.dimension_semantics<parallel>], iteration_bounds = array<i64: 1>, scalar_prefetch = 0 : i64, scratch_operands = 0 : i64, tpu.core_type = #tpu.core_type<tc>, window_params = [{transform_indices = @transform_0, window_bounds = array<i64: 32, 32>}, {pipeline_mode = #tpu.pipeline_mode<synchronous>, transform_indices = @transform_1, window_bounds = array<i64: 32, 128>}, {pipeline_mode = #tpu.pipeline_mode<synchronous>, transform_indices = @transform_2, window_bounds = array<i64: 1, 128>}, {pipeline_mode = #tpu.pipeline_mode<synchronous>, transform_indices = @transform_3, window_bounds = array<i64: 128, 128>}, {pipeline_mode = #tpu.pipeline_mode<synchronous>, transform_indices = @transform_4, window_bounds = array<i64: 1, 128>}, {pipeline_mode = #tpu.pipeline_mode<synchronous>, transform_indices = @transform_5, window_bounds = array<i64: 128, 128>}, {pipeline_mode = #tpu.pipeline_mode<synchronous>, transform_indices = @transform_6, window_bounds = array<i64: 1, 128>}, {transform_indices = @transform_7, window_bounds = array<i64: 32, 128>}]} {
    %c0 = arith.constant 0 : index
    %c0_0 = arith.constant 0 : index
    %0 = vector.load %arg1[%c0, %c0_0] : memref<32x32xf32, #tpu.memory_space<vmem>>, vector<32x32xf32>
    %c0_1 = arith.constant 0 : index
    %c0_2 = arith.constant 0 : index
    %1 = vector.load %arg2[%c0_1, %c0_2] : memref<32x128xbf16, #tpu.memory_space<vmem>>, vector<32x128xbf16>
    %2 = arith.truncf %0 : vector<32x32xf32> to vector<32x32xbf16>
    %cst = arith.constant dense<0.000000e+00> : vector<32x128xf32>
    %3 = tpu.matmul %2, %1, %cst {dimension_numbers = #tpu.dot_dimension_numbers<[1], [0], [0], [1], [0, 0, 1, 1], [], []>} : vector<32x32xbf16>, vector<32x128xbf16>, vector<32x128xf32> -> vector<32x128xf32>
    %c0_3 = arith.constant 0 : index
    %c0_4 = arith.constant 0 : index
    %4 = vector.load %arg3[%c0_3, %c0_4] : memref<1x128xf32, #tpu.memory_space<vmem>>, vector<1x128xf32>
    %5 = vector.broadcast %4 : vector<1x128xf32> to vector<32x128xf32>
    %6 = arith.addf %3, %5 : vector<32x128xf32>
    %7 = arith.negf %6 : vector<32x128xf32>
    %8 = math.exp %7 : vector<32x128xf32>
    %cst_5 = arith.constant 1.000000e+00 : f32
    %9 = vector.broadcast %cst_5 : f32 to vector<32x128xf32>
    %10 = arith.addf %9, %8 : vector<32x128xf32>
    %11 = arith.divf %9, %10 : vector<32x128xf32>
    %12 = arith.mulf %6, %11 : vector<32x128xf32>
    %c0_6 = arith.constant 0 : index
    %c0_7 = arith.constant 0 : index
    %13 = vector.load %arg4[%c0_6, %c0_7] : memref<128x128xbf16, #tpu.memory_space<vmem>>, vector<128x128xbf16>
    %14 = arith.truncf %12 : vector<32x128xf32> to vector<32x128xbf16>
    %cst_8 = arith.constant dense<0.000000e+00> : vector<32x128xf32>
    %15 = tpu.matmul %14, %13, %cst_8 {dimension_numbers = #tpu.dot_dimension_numbers<[1], [0], [0], [1], [0, 0, 1, 1], [], []>} : vector<32x128xbf16>, vector<128x128xbf16>, vector<32x128xf32> -> vector<32x128xf32>
    %c0_9 = arith.constant 0 : index
    %c0_10 = arith.constant 0 : index
    %16 = vector.load %arg5[%c0_9, %c0_10] : memref<1x128xf32, #tpu.memory_space<vmem>>, vector<1x128xf32>
    %17 = vector.broadcast %16 : vector<1x128xf32> to vector<32x128xf32>
    %18 = arith.addf %15, %17 : vector<32x128xf32>
    %19 = arith.negf %18 : vector<32x128xf32>
    %20 = math.exp %19 : vector<32x128xf32>
    %cst_11 = arith.constant 1.000000e+00 : f32
    %21 = vector.broadcast %cst_11 : f32 to vector<32x128xf32>
    %22 = arith.addf %21, %20 : vector<32x128xf32>
    %23 = arith.divf %21, %22 : vector<32x128xf32>
    %24 = arith.mulf %18, %23 : vector<32x128xf32>
    %c0_12 = arith.constant 0 : index
    %c0_13 = arith.constant 0 : index
    %25 = vector.load %arg6[%c0_12, %c0_13] : memref<128x128xbf16, #tpu.memory_space<vmem>>, vector<128x128xbf16>
    %26 = arith.truncf %24 : vector<32x128xf32> to vector<32x128xbf16>
    %cst_14 = arith.constant dense<0.000000e+00> : vector<32x128xf32>
    %27 = tpu.matmul %26, %25, %cst_14 {dimension_numbers = #tpu.dot_dimension_numbers<[1], [0], [0], [1], [0, 0, 1, 1], [], []>} : vector<32x128xbf16>, vector<128x128xbf16>, vector<32x128xf32> -> vector<32x128xf32>
    %c0_15 = arith.constant 0 : index
    %c0_16 = arith.constant 0 : index
    %28 = vector.load %arg7[%c0_15, %c0_16] : memref<1x128xf32, #tpu.memory_space<vmem>>, vector<1x128xf32>
    %29 = vector.broadcast %28 : vector<1x128xf32> to vector<32x128xf32>
    %30 = arith.addf %27, %29 : vector<32x128xf32>
    %31 = arith.negf %30 : vector<32x128xf32>
    %32 = math.exp %31 : vector<32x128xf32>
    %cst_17 = arith.constant 1.000000e+00 : f32
    %33 = vector.broadcast %cst_17 : f32 to vector<32x128xf32>
    %34 = arith.addf %33, %32 : vector<32x128xf32>
    %35 = arith.divf %33, %34 : vector<32x128xf32>
    %36 = arith.mulf %30, %35 : vector<32x128xf32>
    %c0_18 = arith.constant 0 : index
    %c0_19 = arith.constant 0 : index
    %37 = vector.load %arg8[%c0_18, %c0_19] : memref<32x128xf32, #tpu.memory_space<vmem>>, vector<32x128xf32>
    tpu.vector_store %arg8[%c0_18, %c0_19], %36 {strides = array<i32>} : memref<32x128xf32, #tpu.memory_space<vmem>>, vector<32x128xf32>,
    return
  }
  func.func @transform_0(%arg0: i32) -> (i32, i32) {
    %c0_i32 = arith.constant 0 : i32
    %c0_i32_0 = arith.constant 0 : i32
    return %arg0, %c0_i32 : i32, i32
  }
  func.func @transform_1(%arg0: i32) -> (i32, i32) {
    %c0_i32 = arith.constant 0 : i32
    %c0_i32_0 = arith.constant 0 : i32
    %c0_i32_1 = arith.constant 0 : i32
    return %c0_i32, %c0_i32_0 : i32, i32
  }
  func.func @transform_2(%arg0: i32) -> (i32, i32) {
    %c0_i32 = arith.constant 0 : i32
    %c0_i32_0 = arith.constant 0 : i32
    %c0_i32_1 = arith.constant 0 : i32
    return %c0_i32, %c0_i32_0 : i32, i32
  }
  func.func @transform_3(%arg0: i32) -> (i32, i32) {
    %c0_i32 = arith.constant 0 : i32
    %c0_i32_0 = arith.constant 0 : i32
    %c0_i32_1 = arith.constant 0 : i32
    return %c0_i32, %c0_i32_0 : i32, i32
  }
  func.func @transform_4(%arg0: i32) -> (i32, i32) {
    %c0_i32 = arith.constant 0 : i32
    %c0_i32_0 = arith.constant 0 : i32
    %c0_i32_1 = arith.constant 0 : i32
    return %c0_i32, %c0_i32_0 : i32, i32
  }
  func.func @transform_5(%arg0: i32) -> (i32, i32) {
    %c0_i32 = arith.constant 0 : i32
    %c0_i32_0 = arith.constant 0 : i32
    %c0_i32_1 = arith.constant 0 : i32
    return %c0_i32, %c0_i32_0 : i32, i32
  }
  func.func @transform_6(%arg0: i32) -> (i32, i32) {
    %c0_i32 = arith.constant 0 : i32
    %c0_i32_0 = arith.constant 0 : i32
    %c0_i32_1 = arith.constant 0 : i32
    return %c0_i32, %c0_i32_0 : i32, i32
  }
  func.func @transform_7(%arg0: i32) -> (i32, i32) {
    %c0_i32 = arith.constant 0 : i32
    %c0_i32_0 = arith.constant 0 : i32
    return %arg0, %c0_i32 : i32, i32
  }
}

</mosaic_0001>

<bundles_post_ra>
// kernel: tpu_custom_call.1
= control target key start
LH: loop header
LB: loop body
LE: loop exit
PB: predicated region body
PF: predicated region fallthrough
CT: control target
= control target key end

     0   :  { %12 = vsyncpa [#allocation3], 0  ;;  %s897_s0 = inlined_call_operand.hbm [shape: f32[32,32], index: 0, kind: input, shape index: {}]   ;;  %s898_s1 = inlined_call_operand.hbm [shape: bf16[32,128], index: 1, kind: input, shape index: {}]   ;;  %s899_s2 = inlined_call_operand.vmem [shape: f32[1,128], index: 2, kind: input, shape index: {}]   ;;  %s900_s3 = inlined_call_operand.hbm [shape: bf16[128,128], index: 3, kind: input, shape index: {}]   ;;  %s901_s4 = inlined_call_operand.vmem [shape: f32[1,128], index: 4, kind: input, shape index: {}]   ;;  %s902_s5 = inlined_call_operand.hbm [shape: bf16[128,128], index: 5, kind: input, shape index: {}]   ;;  %s903_s6 = inlined_call_operand.vmem [shape: f32[1,128], index: 6, kind: input, shape index: {}]   ;;  %s904_s7 = inlined_call_operand.hbm [shape: f32[32,128], index: 7, kind: output, shape index: {}]  }
   0x1   :  { %13 = vsyncpa [#allocation6], 0 }
   0x2   :  { %14 = vsyncpa [#allocation9], 0 }
   0x3   :  { %15 = vsyncpa [#allocation4], 0  ;;  %s809_s24 = smov [#allocation5]  }
   0x4   :  { %s33_s25 = sshll.u32 %s809_s24, 4  ;;  %s34_s25 = int_to_ptr.vmem [resolvable:$true] %s33_s25 }
   0x5   :  { %s709_s26 = scalar_lea.vmem %s34_s25, 256  ;;  %p714_p1 = scmp.lt.s32.totalorder %s34_s25, %s34_s25 }
   0x6   :  { %p710_p0 = scmp.ne.s32.totalorder %s34_s25, %s709_s26  ;;  %p715_p2 = scmp.lt.s32.totalorder %s709_s26, %s709_s26 }
   0x8   :  { %p716_p3 = por %p715_p2, %p714_p1 }
   0xa   :  { %p717_p4 = pnand %p716_p3, %p710_p0 }
   0xc   :  { %720 = shalt.err (!%p717_p4)
}
   0xd   :  { %s810_s27 = smov 64   ;;  %s811_s28 = smov 4  }
   0xe   :  { %39 = dma.hbm_to_vmem [thread:$0]  %s898_s1, 256, %s34_s25, [#allocation6], %s810_s27, %s810_s27, %s811_s28  }
   0xf   :  { %s812_s8 = smov [#allocation2]  }
  0x10   :  { %s21_s9 = sshll.u32 %s812_s8, 4  ;;  %s22_s9 = int_to_ptr.vmem [resolvable:$true] %s21_s9 }
  0x11   :  { %s729_s10 = scalar_lea.vmem %s22_s9, 512  ;;  %p734_p6 = scmp.lt.s32.totalorder %s22_s9, %s22_s9 }
  0x12   :  { %p730_p5 = scmp.ne.s32.totalorder %s22_s9, %s729_s10  ;;  %p735_p7 = scmp.lt.s32.totalorder %s729_s10, %s729_s10 }
  0x14   :  { %p736_p8 = por %p735_p7, %p734_p6 }
  0x16   :  { %p737_p9 = pnand %p736_p8, %p730_p5 }
  0x18   :  { %740 = shalt.err (!%p737_p9)
}
  0x19   :  { %s813_s11 = smov 128   ;;  %s814_s12 = smov 8  }
  0x1a   :  { %27 = dma.hbm_to_vmem [thread:$0]  %s897_s0, 512, %s22_s9, [#allocation3], %s813_s11, %s813_s11, %s814_s12  }
  0x1b   :  { %s815_s1 = smov [#allocation7]   ;;  %s816_s16 = smov [#allocation8]  }
  0x1c   :  { %s47_s15 = sshll.u32 %s815_s1, 4  ;;  %s61_s17 = sshll.u32 %s816_s16, 4  ;;  %s48_s15 = int_to_ptr.vmem [resolvable:$true] %s47_s15  ;;  %s62_s17 = int_to_ptr.vmem [resolvable:$true] %s61_s17 }
  0x1d   :  { %s749_s18 = scalar_lea.vmem %s48_s15, 1024  ;;  %p754_p11 = scmp.lt.s32.totalorder %s48_s15, %s48_s15 }
  0x1e   :  { %p750_p10 = scmp.ne.s32.totalorder %s48_s15, %s749_s18  ;;  %p755_p12 = scmp.lt.s32.totalorder %s749_s18, %s749_s18 }
  0x20   :  { %p756_p13 = por %p755_p12, %p754_p11 }
  0x22   :  { %p757_p0 = pnand %p756_p13, %p750_p10 }
  0x24   :  { %760 = shalt.err (!%p757_p0)
}
  0x25   :  { %53 = dma.hbm_to_vmem [thread:$0]  %s900_s3, 1024, %s48_s15, [#allocation6], %s810_s27, %s810_s27, %s811_s28  }
  0x26   :  { %s769_s0 = scalar_lea.vmem %s62_s17, 1024  ;;  %p774_p2 = scmp.lt.s32.totalorder %s62_s17, %s62_s17 }
  0x27   :  { %p770_p1 = scmp.ne.s32.totalorder %s62_s17, %s769_s0  ;;  %p775_p3 = scmp.lt.s32.totalorder %s769_s0, %s769_s0 }
  0x29   :  { %p776_p4 = por %p775_p3, %p774_p2 }
  0x2b   :  { %p777_p5 = pnand %p776_p4, %p770_p1 }
  0x2d   :  { %780 = shalt.err (!%p777_p5)
}
  0x2e   :  { %67 = dma.hbm_to_vmem [thread:$0]  %s902_s5, 1024, %s62_s17, [#allocation9], %s810_s27, %s810_s27, %s811_s28  }
  0x2f   :  { %801 = dma.done.wait [#allocation3], 512  }
  0x30   :  { %802 = vsyncadd [#allocation3], 4294966784 }
  0x31   :  { %803 = dma.done.wait [#allocation6], 1280  }
  0x32   :  { %804 = vsyncadd [#allocation6], 4294966016 }
  0x33   :  { %805 = dma.done.wait [#allocation9], 1024  }
  0x34   :  { %806 = vsyncadd [#allocation9], 4294966272  ;;  %v635_v0 = vld [vmem:[#allocation5 + $0x8] sm:$0xff]   ;;  %v636_v1 = vld [vmem:[#allocation5] sm:$0xff]   ;;  %vm112_vm0 = vcmask 261120  }
  0x35   :  { %578 = vmatprep.subr.bf16.mxu0 %v635_v0  ;;  %v83_v2 = vld [vmem:[#allocation2] sm:$0xff]  ;;  %v84_v3 = vld [vmem:[#allocation2 + $0x8] sm:$0xff]  ;;  %v85_v4 = vld [vmem:[#allocation2 + $0x10] sm:$0xff] }
  0x36   :  { %579 = vmatpush3.bf16.msra.mxu0 %v635_v0  ;;  %v91_v5 = vpack.c.bf16 %v84_v3, %v83_v2  ;;  %v86_v6 = vld [vmem:[#allocation2 + $0x18] sm:$0xff]  ;;  %v637_v8 = vld [vmem:[#allocation7 + $0x38] sm:$0xff]   ;;  %v638_v9 = vld [vmem:[#allocation7 + $0x30] sm:$0xff]  }
  0x37   :  { %580 = vmatprep.subr.bf16.mxu0 %v636_v1  ;;  %v92_v7 = vpack.c.bf16 %v86_v6, %v85_v4  ;;  %586 = vmatprep.subr.bf16.mxu1 %v637_v8  ;;  %v639_v10 = vld [vmem:[#allocation7 + $0x28] sm:$0xff]   ;;  %v640_v11 = vld [vmem:[#allocation7 + $0x20] sm:$0xff]   ;;  %v641_v12 = vld [vmem:[#allocation7 + $0x18] sm:$0xff]  }
  0x38   :  { %582 = vmatprep.mubr.msk.bf16.mxu0 %vm112_vm0, %v91_v5  ;;  %587 = vmatpush3.bf16.msra.mxu1 %v637_v8  ;;  %v642_v13 = vld [vmem:[#allocation7 + $0x10] sm:$0xff]   ;;  %v643_v14 = vld [vmem:[#allocation7 + $0x8] sm:$0xff]   ;;  %v644_v15 = vld [vmem:[#allocation7] sm:$0xff]  }
  0x39   :  { %588 = vmatprep.subr.bf16.mxu1 %v638_v9  ;;  %v519_v16 = vld [vmem:[%s899_s2] ss:$0 sm:$0xff]  ;;  %v645_v47 = vld [vmem:[#allocation8 + $0x38] sm:$0xff]   ;;  %v647_v49 = vld [vmem:[#allocation8 + $0x28] sm:$0xff]  }
  0x3a   :  { %581 = vmatpush3.bf16.msra.mxu0 %v636_v1  ;;  %v646_v48 = vld [vmem:[#allocation8 + $0x30] sm:$0xff]   ;;  %v648_v50 = vld [vmem:[#allocation8 + $0x20] sm:$0xff]   ;;  %v649_v51 = vld [vmem:[#allocation8 + $0x18] sm:$0xff]  }
  0x3b   :  { %606 = vmatprep.subr.bf16.mxu0 %v645_v47  ;;  %v650_v52 = vld [vmem:[#allocation8 + $0x10] sm:$0xff]   ;;  %v651_v53 = vld [vmem:[#allocation8 + $0x8] sm:$0xff]   ;;  %v652_v54 = vld [vmem:[#allocation8] sm:$0xff]  }
  0x3c   :  { %589 = vmatpush3.bf16.msra.mxu1 %v638_v9  ;;  %v528_v55 = vld [vmem:[%s901_s4] ss:$0 sm:$0xff] }
  0x3d   :  { %583 = vmatmul.mubr.msk.bf16.vlgmr.msra.gmra.mxu0 %vm112_vm0, %v92_v7  ;;  %590 = vmatprep.subr.bf16.mxu1 %v639_v10 }
  0x3e   :  { %607 = vmatpush3.bf16.msra.mxu0 %v645_v47 }
  0x3f   :  { %608 = vmatprep.subr.bf16.mxu0 %v646_v48 }
  0x40   :  { %591 = vmatpush3.bf16.msra.mxu1 %v639_v10 }
  0x41   :  { %592 = vmatprep.subr.bf16.mxu1 %v640_v11 }
  0x42   :  { %609 = vmatpush3.bf16.msra.mxu0 %v646_v48 }
  0x43   :  { %610 = vmatprep.subr.bf16.mxu0 %v647_v49 }
  0x44   :  { %593 = vmatpush3.bf16.msra.mxu1 %v640_v11 }
  0x45   :  { %594 = vmatprep.subr.bf16.mxu1 %v641_v12 }
  0x46   :  { %611 = vmatpush3.bf16.msra.mxu0 %v647_v49 }
  0x47   :  { %612 = vmatprep.subr.bf16.mxu0 %v648_v50 }
  0x48   :  { %595 = vmatpush3.bf16.msra.mxu1 %v641_v12 }
  0x49   :  { %596 = vmatprep.subr.bf16.mxu1 %v642_v13 }
  0x4a   :  { %613 = vmatpush3.bf16.msra.mxu0 %v648_v50 }
  0x4b   :  { %614 = vmatprep.subr.bf16.mxu0 %v649_v51 }
  0x4c   :  { %597 = vmatpush3.bf16.msra.mxu1 %v642_v13 }
  0x4d   :  { %598 = vmatprep.subr.bf16.mxu1 %v643_v14 }
  0x4e   :  { %615 = vmatpush3.bf16.msra.mxu0 %v649_v51 }
  0x4f   :  { %616 = vmatprep.subr.bf16.mxu0 %v650_v52 }
  0x50   :  { %599 = vmatpush3.bf16.msra.mxu1 %v643_v14 }
  0x51   :  { %600 = vmatprep.subr.bf16.mxu1 %v644_v15 }
  0x52   :  { %617 = vmatpush3.bf16.msra.mxu0 %v650_v52 }
  0x53   :  { %618 = vmatprep.subr.bf16.mxu0 %v651_v53 }
  0x54   :  { %601 = vmatpush3.bf16.msra.mxu1 %v644_v15 }
  0x56   :  { %619 = vmatpush3.bf16.msra.mxu0 %v651_v53 }
  0x57   :  { %620 = vmatprep.subr.bf16.mxu0 %v652_v54 }
  0x5a   :  { %621 = vmatpush3.bf16.msra.mxu0 %v652_v54 }
  0xfd   :  { %v584_v17 = vpop.f32.mrf.mxu0 }
  0xfe   :  { %v162_v18 = vadd.f32 %v584_v17, %v519_v16 }
  0xff   :  { %v153_v19 = vpop.f32.mrf.mxu0 }
 0x100   :  { %v526_v20 = vmul.f32 -1.442695, %v162_v18  ;;  %v154_v21 = vadd.f32 %v519_v16, %v153_v19 }
 0x101   :  { %v585_v22 = vpop.f32.mrf.mxu0 }
 0x102   :  { %v524_v23 = vmul.f32 -1.442695, %v154_v21  ;;  %v165_v24 = vadd.f32 %v585_v22, %v519_v16  ;;  %653 = vpow2.f32 %v526_v20  ;;  %v541_v22 = vld [vmem:[%s903_s6] ss:$0 sm:$0xff]  ;;  %s817_s6 = smov [#allocation10]  }
 0x103   :  { %v156_v25 = vpop.f32.mrf.mxu0  ;;  %s505_s25 = sshll.u32 %s817_s6, 4  ;;  %s506_s25 = int_to_ptr.vmem [resolvable:$true] %s505_s25 }
 0x104   :  { %655 = vpow2.f32 %v524_v23  ;;  %v527_v26 = vmul.f32 -1.442695, %v165_v24  ;;  %v157_v27 = vadd.f32 %v519_v16, %v156_v25  ;;  %s781_s26 = scalar_lea.vmem %s506_s25, 512  ;;  %p786_p7 = scmp.lt.s32.totalorder %s506_s25, %s506_s25 }
 0x105   :  { %p782_p6 = scmp.ne.s32.totalorder %s506_s25, %s781_s26  ;;  %p787_p8 = scmp.lt.s32.totalorder %s781_s26, %s781_s26 }
 0x106   :  { %657 = vpow2.f32 %v527_v26  ;;  %v525_v28 = vmul.f32 -1.442695, %v157_v27 }
 0x107   :  { %p788_p9 = por %p787_p8, %p786_p7 }
 0x108   :  { %659 = vpow2.f32 %v525_v28 }
 0x109   :  { %p789_p10 = pnand %p788_p9, %p782_p6 }
 0x10f   :  { %v654_v29 = vpop.eup %653 }
 0x110   :  { %v182_v33 = vadd.f32 1.0, %v654_v29 }
 0x111   :  { %v656_v30 = vpop.eup %655 }
 0x112   :  { %v180_v31 = vadd.f32 1.0, %v656_v30 }
 0x113   :  { %v658_v32 = vpop.eup %657 }
 0x114   :  { %v183_v34 = vadd.f32 1.0, %v658_v32  ;;  %661 = vrcp.f32 %v180_v31 }
 0x115   :  { %v660_v35 = vpop.eup %659 }
 0x116   :  { %663 = vrcp.f32 %v183_v34  ;;  %v181_v36 = vadd.f32 1.0, %v660_v35 }
 0x117   :  { %665 = vrcp.f32 %v182_v33 }
 0x118   :  { %667 = vrcp.f32 %v181_v36 }
 0x121   :  { %v662_v37 = vpop.eup %661 }
 0x122   :  { %v192_v42 = vmul.f32 %v662_v37, %v154_v21 }
 0x123   :  { %v664_v38 = vpop.eup %663 }
 0x124   :  { %v666_v39 = vpop.eup %665  ;;  %v195_v41 = vmul.f32 %v664_v38, %v165_v24 }
 0x125   :  { %v668_v40 = vpop.eup %667  ;;  %v194_v44 = vmul.f32 %v666_v39, %v162_v18 }
 0x126   :  { %v193_v43 = vmul.f32 %v668_v40, %v157_v27 }
 0x127   :  { %v213_v46 = vpack.c.bf16 %v195_v41, %v194_v44 }
 0x128   :  { %v212_v45 = vpack.c.bf16 %v193_v43, %v192_v42 }
 0x12a   :  { %602 = vmatprep.mubr.bf16.mxu1 %v212_v45 }
 0x12b   :  { %603 = vmatmul.mubr.bf16.vlgmr.msra.gmra.mxu1 %v213_v46 }
 0x1eb   :  { %v604_v56 = vpop.f32.mrf.mxu1 }
 0x1ec   :  { %v312_v57 = vadd.f32 %v604_v56, %v528_v55 }
 0x1ed   :  { %v303_v58 = vpop.f32.mrf.mxu1 }
 0x1ee   :  { %v539_v59 = vmul.f32 -1.442695, %v312_v57  ;;  %v304_v60 = vadd.f32 %v528_v55, %v303_v58 }
 0x1ef   :  { %v605_v61 = vpop.f32.mrf.mxu1 }
 0x1f0   :  { %v537_v62 = vmul.f32 -1.442695, %v304_v60  ;;  %v315_v63 = vadd.f32 %v605_v61, %v528_v55  ;;  %669 = vpow2.f32 %v539_v59 }
 0x1f1   :  { %v306_v0 = vpop.f32.mrf.mxu1 }
 0x1f2   :  { %671 = vpow2.f32 %v537_v62  ;;  %v540_v1 = vmul.f32 -1.442695, %v315_v63  ;;  %v307_v2 = vadd.f32 %v528_v55, %v306_v0 }
 0x1f4   :  { %673 = vpow2.f32 %v540_v1  ;;  %v538_v3 = vmul.f32 -1.442695, %v307_v2 }
 0x1f6   :  { %675 = vpow2.f32 %v538_v3 }
 0x1fd   :  { %v670_v4 = vpop.eup %669 }
 0x1fe   :  { %v332_v8 = vadd.f32 1.0, %v670_v4 }
 0x1ff   :  { %v672_v5 = vpop.eup %671 }
 0x200   :  { %v330_v6 = vadd.f32 1.0, %v672_v5 }
 0x201   :  { %v674_v7 = vpop.eup %673 }
 0x202   :  { %v333_v9 = vadd.f32 1.0, %v674_v7  ;;  %677 = vrcp.f32 %v330_v6 }
 0x203   :  { %v676_v10 = vpop.eup %675 }
 0x204   :  { %679 = vrcp.f32 %v333_v9  ;;  %v331_v11 = vadd.f32 1.0, %v676_v10 }
 0x205   :  { %681 = vrcp.f32 %v332_v8 }
 0x206   :  { %683 = vrcp.f32 %v331_v11 }
 0x20f   :  { %v678_v12 = vpop.eup %677 }
 0x210   :  { %v342_v17 = vmul.f32 %v678_v12, %v304_v60 }
 0x211   :  { %v680_v13 = vpop.eup %679 }
 0x212   :  { %v682_v14 = vpop.eup %681  ;;  %v345_v16 = vmul.f32 %v680_v13, %v315_v63 }
 0x213   :  { %v684_v15 = vpop.eup %683  ;;  %v344_v19 = vmul.f32 %v682_v14, %v312_v57 }
 0x214   :  { %v343_v18 = vmul.f32 %v684_v15, %v307_v2 }
 0x215   :  { %v363_v21 = vpack.c.bf16 %v345_v16, %v344_v19 }
 0x216   :  { %v362_v20 = vpack.c.bf16 %v343_v18, %v342_v17 }
 0x218   :  { %622 = vmatprep.mubr.bf16.mxu0 %v362_v20 }
 0x219   :  { %623 = vmatmul.mubr.bf16.vlgmr.msra.gmra.mxu0 %v363_v21 }
 0x2d9   :  { %v624_v23 = vpop.f32.mrf.mxu0 }
 0x2da   :  { %v462_v24 = vadd.f32 %v624_v23, %v541_v22 }
 0x2db   :  { %v453_v25 = vpop.f32.mrf.mxu0 }
 0x2dc   :  { %v552_v26 = vmul.f32 -1.442695, %v462_v24  ;;  %v454_v27 = vadd.f32 %v541_v22, %v453_v25 }
 0x2dd   :  { %v625_v28 = vpop.f32.mrf.mxu0 }
 0x2de   :  { %685 = vpow2.f32 %v552_v26  ;;  %v550_v29 = vmul.f32 -1.442695, %v454_v27  ;;  %v465_v30 = vadd.f32 %v625_v28, %v541_v22 }
 0x2df   :  { %v456_v31 = vpop.f32.mrf.mxu0 }
 0x2e0   :  { %687 = vpow2.f32 %v550_v29  ;;  %v553_v32 = vmul.f32 -1.442695, %v465_v30  ;;  %v457_v33 = vadd.f32 %v541_v22, %v456_v31 }
 0x2e2   :  { %689 = vpow2.f32 %v553_v32  ;;  %v551_v34 = vmul.f32 -1.442695, %v457_v33 }
 0x2e4   :  { %691 = vpow2.f32 %v551_v34 }
 0x2eb   :  { %v686_v35 = vpop.eup %685 }
 0x2ec   :  { %v482_v36 = vadd.f32 1.0, %v686_v35 }
 0x2ed   :  { %v688_v37 = vpop.eup %687 }
 0x2ee   :  { %693 = vrcp.f32 %v482_v36  ;;  %v480_v38 = vadd.f32 1.0, %v688_v37 }
 0x2ef   :  { %v690_v39 = vpop.eup %689 }
 0x2f0   :  { %695 = vrcp.f32 %v480_v38  ;;  %v483_v40 = vadd.f32 1.0, %v690_v39 }
 0x2f1   :  { %v692_v41 = vpop.eup %691 }
 0x2f2   :  { %697 = vrcp.f32 %v483_v40  ;;  %v481_v42 = vadd.f32 1.0, %v692_v41 }
 0x2f4   :  { %699 = vrcp.f32 %v481_v42 }
 0x2fb   :  { %v694_v43 = vpop.eup %693 }
 0x2fc   :  { %v494_v44 = vmul.f32 %v694_v43, %v462_v24 }
 0x2fd   :  { %v696_v45 = vpop.eup %695 }
 0x2fe   :  { %498 = vst [vmem:[#allocation10 + $0x10] sm:$0xff] %v494_v44  ;;  %v492_v46 = vmul.f32 %v696_v45, %v454_v27 }
 0x2ff   :  { %v698_v47 = vpop.eup %697 }
 0x300   :  { %496 = vst [vmem:[#allocation10] sm:$0xff] %v492_v46  ;;  %v495_v48 = vmul.f32 %v698_v47, %v465_v30 }
 0x301   :  { %v700_v49 = vpop.eup %699 }
 0x302   :  { %499 = vst [vmem:[#allocation10 + $0x18] sm:$0xff] %v495_v48  ;;  %v493_v50 = vmul.f32 %v700_v49, %v457_v33 }
 0x304   :  { %497 = vst [vmem:[#allocation10 + $0x8] sm:$0xff] %v493_v50 }
 0x305   :  { %792 = shalt.err (!%p789_p10)
}
 0x306   :  { %511 = dma.vmem_to_hbm [thread:$0]  %s506_s25, 512, %s904_s7, [#allocation4], %s813_s11, %s813_s11, %s814_s12  }
 0x307   :  { %807 = dma.done.wait [#allocation4], 512  }
 0x308   :  { %808 = vsyncadd [#allocation4], 4294966784 }
 0x309   :  { %515 = vsyncpa [#allocation3], 1 }
 0x30a   :  { %516 = vsyncpa [#allocation6], 1 }
 0x30b   :  { %517 = vsyncpa [#allocation9], 1 }
 0x30c   :  { %518 = vsyncpa [#allocation4], 1 }

</bundles_post_ra>
